<compile_context>
chip_gen: v6e
topology: v6e:2x2x1
jax: 0.10.0
libtpu: 0.0.40
codegen_flags: <defaults>
</compile_context>

<pallas_src>
import jax
import jax.numpy as jnp
from jax.experimental import pallas as pl
from jax.experimental.pallas import tpu as pltpu


def se_kernel(x_ref, w1t_ref, w2t_ref, o_ref):
    # x_ref / o_ref: (G, C, HW) block of G batch elements.
    # w1t_ref: (C, mid) = fc1.weight.T (f32).  w2t_ref: (mid, C) = fc2.weight.T (f32).
    hw = x_ref.shape[-1]

    # Squeeze: AdaptiveAvgPool2d(1) == mean over all spatial positions.
    # Accumulate in f32 (important for bf16 inputs / large HW) without keeping
    # a full f32 copy of the tile live.
    pooled = jnp.sum(x_ref[...], axis=-1, dtype=jnp.float32) * (1.0 / hw)   # (G, C)

    # Excite: fc1 -> ReLU -> fc2 -> sigmoid, as batched GEMMs in f32 (MXU).
    h = jnp.dot(pooled, w1t_ref[...], preferred_element_type=jnp.float32)   # (G, mid)
    h = jnp.maximum(h, 0.0)
    s = jnp.dot(h, w2t_ref[...], preferred_element_type=jnp.float32)        # (G, C)
    s = jax.nn.sigmoid(s)                                                    # EUP

    # Scale: broadcast the (G, C) gate over the spatial (lane) axis in the
    # input dtype; dense vst since HW is a multiple of 128.
    o_ref[...] = x_ref[...] * s.astype(o_ref.dtype)[:, :, None]


def _pick_group(batch, channels, hw, itemsize, budget_bytes=24 * 1024 * 1024):
    """Largest divisor G of `batch` whose double-buffered in+out blocks fit the budget.

    Per-step VMEM ~= 2 (double-buffer) * (in + out) * G * C * HW * itemsize.
    Also capped at batch // 2 (when possible) so the grid length stays >= 2,
    letting the parallel axis shard across v7x's two TensorCores.
    """
    per_elem = 4 * channels * hw * itemsize
    g_max = max(1, budget_bytes // per_elem)
    if batch >= 2:
        g_max = min(g_max, max(1, batch // 2))
    g = 1
    for d in range(1, batch + 1):
        if batch % d == 0 and d <= g_max:
            g = d
    return g


def se_layer(x_nchw, w1, w2):
    """SELayer forward.

    x_nchw: (B, C, H, W).
    w1: (C//r, C)  fc1 weight (PyTorch nn.Linear(out, in) layout, no bias).
    w2: (C, C//r)  fc2 weight.
    """
    B, C, H, W = x_nchw.shape
    HW = H * W
    mid = w1.shape[0]

    x = x_nchw.reshape(B, C, HW)
    # Hoist weight transpose + f32 cast out of the per-step kernel body.
    w1t = w1.T.astype(jnp.float32)   # (C, mid)
    w2t = w2.T.astype(jnp.float32)   # (mid, C)

    G = _pick_group(B, C, HW, x.dtype.itemsize)
    grid = (B // G,)

    out = pl.pallas_call(
        se_kernel,
        out_shape=jax.ShapeDtypeStruct((B, C, HW), x.dtype),
        grid_spec=pltpu.PrefetchScalarGridSpec(
            num_scalar_prefetch=0,
            grid=grid,
            in_specs=[
                pl.BlockSpec((G, C, HW), lambda b: (b, 0, 0)),  # batch-group of x
                pl.BlockSpec((C, mid), lambda b: (0, 0)),       # fc1 weight^T (whole)
                pl.BlockSpec((mid, C), lambda b: (0, 0)),       # fc2 weight^T (whole)
            ],
            out_specs=pl.BlockSpec((G, C, HW), lambda b: (b, 0, 0)),
        ),
        compiler_params=pltpu.CompilerParams(
            dimension_semantics=("parallel",),
            vmem_limit_bytes=64 * 1024 * 1024,
        ),
    )(x, w1t, w2t)
    return out.reshape(B, C, H, W)


if __name__ == "__main__":
    # Shapes consistent with SELayer(channel=64, reduction=16); H=W=16 keeps the
    # spatial (lane) axis a multiple of 128 for dense stores.
    B, C, H, W = 8, 64, 16, 16
    reduction = 16
    mid = C // reduction

    key = jax.random.PRNGKey(0)
    kx, k1, k2 = jax.random.split(key, 3)
    x = jax.random.normal(kx, (B, C, H, W), dtype=jnp.float32)
    # PyTorch nn.Linear(in, out, bias=False) weight shape is (out, in).
    w1 = jax.random.normal(k1, (mid, C), dtype=jnp.float32) * 0.1   # fc1: C -> C//r
    w2 = jax.random.normal(k2, (C, mid), dtype=jnp.float32) * 0.1   # fc2: C//r -> C

    out = jax.block_until_ready(se_layer(x, w1, w2))

    # Pure-JAX reference of the PyTorch forward.
    y_ref = x.mean(axis=(2, 3))                                     # (B, C)
    h_ref = jnp.maximum(y_ref @ w1.T, 0.0)                          # (B, mid)
    s_ref = jax.nn.sigmoid(h_ref @ w2.T)                            # (B, C)
    ref = x * s_ref[:, :, None, None]

    assert out.shape == x.shape and out.dtype == x.dtype
    assert jnp.allclose(out, ref, atol=1e-5, rtol=1e-5)
    print("KERNEL_OK")
</pallas_src>

<mosaic_0001>
module attributes {stable_mosaic.version = 11 : i64} {
  func.func @se_kernel(%arg0: i32, %arg1: memref<4x64x256xf32, #tpu.memory_space<vmem>>, %arg2: memref<64x4xf32, #tpu.memory_space<vmem>>, %arg3: memref<4x64xf32, #tpu.memory_space<vmem>>, %arg4: memref<4x64x256xf32, #tpu.memory_space<vmem>>) attributes {dimension_semantics = [#tpu.dimension_semantics<parallel>], iteration_bounds = array<i64: 2>, scalar_prefetch = 0 : i64, scratch_operands = 0 : i64, tpu.core_type = #tpu.core_type<tc>, window_params = [{transform_indices = @transform_0, window_bounds = array<i64: 4, 64, 256>}, {pipeline_mode = #tpu.pipeline_mode<synchronous>, transform_indices = @transform_1, window_bounds = array<i64: 64, 4>}, {pipeline_mode = #tpu.pipeline_mode<synchronous>, transform_indices = @transform_2, window_bounds = array<i64: 4, 64>}, {transform_indices = @transform_3, window_bounds = array<i64: 4, 64, 256>}]} {
    %c0 = arith.constant 0 : index
    %c0_0 = arith.constant 0 : index
    %c0_1 = arith.constant 0 : index
    %0 = vector.load %arg1[%c0, %c0_0, %c0_1] : memref<4x64x256xf32, #tpu.memory_space<vmem>>, vector<4x64x256xf32>
    %cst = arith.constant dense<0.000000e+00> : vector<4x64xf32>
    %1 = vector.multi_reduction <add>, %0, %cst [2] : vector<4x64x256xf32> to vector<4x64xf32>
    %cst_2 = arith.constant 3.906250e-03 : f32
    %2 = vector.broadcast %cst_2 : f32 to vector<4x64xf32>
    %3 = arith.mulf %1, %2 : vector<4x64xf32>
    %c0_3 = arith.constant 0 : index
    %c0_4 = arith.constant 0 : index
    %4 = vector.load %arg2[%c0_3, %c0_4] : memref<64x4xf32, #tpu.memory_space<vmem>>, vector<64x4xf32>
    %cst_5 = arith.constant dense<0.000000e+00> : vector<4x4xf32>
    %5 = tpu.matmul %3, %4, %cst_5 {dimension_numbers = #tpu.dot_dimension_numbers<[1], [0], [0], [1], [0, 0, 1, 1], [], []>} : vector<4x64xf32>, vector<64x4xf32>, vector<4x4xf32> -> vector<4x4xf32>
    %cst_6 = arith.constant 0.000000e+00 : f32
    %6 = vector.broadcast %cst_6 : f32 to vector<4x4xf32>
    %7 = arith.maximumf %5, %6 : vector<4x4xf32>
    %c0_7 = arith.constant 0 : index
    %c0_8 = arith.constant 0 : index
    %8 = vector.load %arg3[%c0_7, %c0_8] : memref<4x64xf32, #tpu.memory_space<vmem>>, vector<4x64xf32>
    %cst_9 = arith.constant dense<0.000000e+00> : vector<4x64xf32>
    %9 = tpu.matmul %7, %8, %cst_9 {dimension_numbers = #tpu.dot_dimension_numbers<[1], [0], [0], [1], [0, 0, 1, 1], [], []>} : vector<4x4xf32>, vector<4x64xf32>, vector<4x64xf32> -> vector<4x64xf32>
    %10 = arith.negf %9 : vector<4x64xf32>
    %11 = math.exp %10 : vector<4x64xf32>
    %cst_10 = arith.constant 1.000000e+00 : f32
    %12 = vector.broadcast %cst_10 : f32 to vector<4x64xf32>
    %13 = arith.addf %12, %11 : vector<4x64xf32>
    %14 = arith.divf %12, %13 : vector<4x64xf32>
    %c0_11 = arith.constant 0 : index
    %c0_12 = arith.constant 0 : index
    %c0_13 = arith.constant 0 : index
    %15 = vector.load %arg1[%c0_11, %c0_12, %c0_13] : memref<4x64x256xf32, #tpu.memory_space<vmem>>, vector<4x64x256xf32>
    %16 = vector.shape_cast %14 : vector<4x64xf32> to vector<4x64x1xf32>
    %17 = vector.broadcast %16 : vector<4x64x1xf32> to vector<4x64x256xf32>
    %18 = arith.mulf %15, %17 : vector<4x64x256xf32>
    %c0_14 = arith.constant 0 : index
    %c0_15 = arith.constant 0 : index
    %c0_16 = arith.constant 0 : index
    %19 = vector.load %arg4[%c0_14, %c0_15, %c0_16] : memref<4x64x256xf32, #tpu.memory_space<vmem>>, vector<4x64x256xf32>
    tpu.vector_store %arg4[%c0_14, %c0_15, %c0_16], %18 {strides = array<i32>} : memref<4x64x256xf32, #tpu.memory_space<vmem>>, vector<4x64x256xf32>,
    return
  }
  func.func @transform_0(%arg0: i32) -> (i32, i32, i32) {
    %c0_i32 = arith.constant 0 : i32
    %c0_i32_0 = arith.constant 0 : i32
    %c0_i32_1 = arith.constant 0 : i32
    return %arg0, %c0_i32, %c0_i32_0 : i32, i32, i32
  }
  func.func @transform_1(%arg0: i32) -> (i32, i32) {
    %c0_i32 = arith.constant 0 : i32
    %c0_i32_0 = arith.constant 0 : i32
    %c0_i32_1 = arith.constant 0 : i32
    return %c0_i32, %c0_i32_0 : i32, i32
  }
  func.func @transform_2(%arg0: i32) -> (i32, i32) {
    %c0_i32 = arith.constant 0 : i32
    %c0_i32_0 = arith.constant 0 : i32
    %c0_i32_1 = arith.constant 0 : i32
    return %c0_i32, %c0_i32_0 : i32, i32
  }
  func.func @transform_3(%arg0: i32) -> (i32, i32, i32) {
    %c0_i32 = arith.constant 0 : i32
    %c0_i32_0 = arith.constant 0 : i32
    %c0_i32_1 = arith.constant 0 : i32
    return %arg0, %c0_i32, %c0_i32_0 : i32, i32, i32
  }
}

</mosaic_0001>

<bundles_post_ra>
// kernel: tpu_custom_call.1
= control target key start
LH: loop header
LB: loop body
LE: loop exit
PB: predicated region body
PF: predicated region fallthrough
CT: control target
= control target key end

     0   :  { %8 = vsyncpa [#allocation3], 0  ;;  %s2038_s0 = inlined_call_operand.hbm [shape: f32[8,64,256], index: 0, kind: input, shape index: {}]   ;;  %s2039_s1 = inlined_call_operand.vmem [shape: f32[64,4], index: 1, kind: input, shape index: {}]   ;;  %s2040_s2 = inlined_call_operand.vmem [shape: f32[4,64], index: 2, kind: input, shape index: {}]   ;;  %s2041_s3 = inlined_call_operand.hbm [shape: f32[8,64,256], index: 3, kind: output, shape index: {}]  }
   0x1   :  { %10 = vsyncpa [#allocation3 + $0x1], 0 }
   0x2   :  { %11 = vsyncpa [#allocation4], 0 }
   0x3   :  { %13 = vsyncpa [#allocation4 + $0x1], 0  ;;  %s1354_s12 = smov 0   ;;  %s1356_s13 = smov 0  }
   0x4   :  { %s1358_s14 = smov 0   ;;  %s1360_s15 = smov 0  }
   0x5 LB: > { %s1375_s16 = sadd.s32 4294967295, %s1324_s15   ;;  %s1117_s17 = sadd.s32 4294967294, %s1324_s15   ;;  %s1324_s15 = sphi %s1360_s15, %s2191_s15   ;;  %s1320_s14 = sphi %s1358_s14, %s2190_s14   ;;  %s1316_s13 = sphi %s1356_s13, %s2189_s13   ;;  %s1312_s12 = sphi %s1354_s12, %s2188_s12  }
   0x6   : > { %s1379_s18 = sadd.s32 1, %s1324_s15   ;;  %s26_s19 = sadd.s32 1, %s1320_s14 }
   0x7   : > { %s23_s20 = ssub.s32 %s1324_s15, %s1379_s18  ;;  %p33_p0 = scmp.ne.s32.totalorder %s1320_s14, %s1316_s13 }
   0x8   : > { %p24_p1 = scmp.eq.s32.totalorder %s23_s20, 0  ;;  %p34_p2 = scmp.eq.s32.totalorder %s1324_s15, 0 }
   0x9   : > { %p39_p3 = scmp.ne.s32.totalorder %s1316_s13, %s1312_s12  ;;  %p40_p4 = scmp.eq.s32.totalorder %s1375_s16, 0 }
   0xa   : > { %s1391_s21 = scalar_select %p24_p1, %s1320_s14, %s26_s19  }
   0xb   : > { %p1393_p5 = por %p34_p2, %p33_p0  ;;  %p1397_p6 = por %p40_p4, %p39_p3 }
   0xc   : > { %p105_p7 = scmp.eq.s32.totalorder %s1375_s16, 1  ;;  %p111_p8 = scmp.eq.s32.totalorder %s1117_s17, 1 }
   0xd   : > { %s2090_s23 = scalar_select %p1397_p6, 1, 0 }
   0xe   : > { %p1188_p10 = scmp.lt.s32.totalorder %s1324_s15, 2  ;;  %p1404_p11 = por %p105_p7, %p33_p0 }
   0xf   : > { %p1408_p12 = por %p111_p8, %p39_p3  ;;  %s137_s26 = sand.u32 1, %s1320_s14  }
  0x10   : > { %s2091_s24 = scalar_select %p1404_p11, 1, 0 }
  0x11   : > { %s2092_s25 = scalar_select %p1408_p12, 1, 0 }
  0x12   : > { %s1138_s27 = sshll.u32 %s1324_s15, 13  ;;  %s1120_s28 = sshll.u32 %s137_s26, 9 }
  0x13   : > { %s1417_s4 = scalar_lea.hbm %s2038_s0, %s1138_s27  ;;  %s141_s5 = scalar_lea.vmem [#allocation2], %s1120_s28 }
  0x14   : > { %s149_s6 = sshll.u32 %s141_s5, 4  ;;  %p1421_p13 = pnand %p1188_p10, %p1393_p5  ;;  %s1425_s6 = int_to_ptr.vmem [resolvable:$true] %s149_s6 }
  0x15   : > { %s1427_s8 = scalar_lea.sflag [#allocation3], %s137_s26  ;;  %s1232_s9 = scalar_lea.hbm %s1417_s4, 8192 }
  0x16   : > { %p1233_p0 = scmp.ne.s32.totalorder %s1417_s4, %s1232_s9  ;;  %p1234_p1 = pneg %p1421_p13 }
  0x17   : > { %s1237_s17 = scalar_lea.hbm %s2038_s0, 16384  ;;  %p1238_p4 = scmp.lt.s32.totalorder %s1417_s4, %s2038_s0 }
  0x18   : > { %p1235_p2 = pnand %p1234_p1, %p1233_p0  ;;  %p1239_p5 = scmp.lt.s32.totalorder %s1237_s17, %s1232_s9 }
  0x1a   : > { %p1236_p3 = pneg %p1235_p2  ;;  %p1240_p7 = por %p1239_p5, %p1238_p4 }
  0x1c   : > { %p1241_p8 = pnand %p1240_p7, %p1236_p3 }
  0x1e   : > { %1244 = shalt.err (!%p1241_p8)
}
  0x1f   : > { %s1245_s22 = scalar_lea.vmem %s1425_s6, 8192  ;;  %s1326_s26 = smov [#allocation2]  }
  0x20   : > { %p1246_p10 = scmp.ne.s32.totalorder %s1425_s6, %s1245_s22  ;;  %s1250_s27 = sshll.u32 %s1326_s26, 4  ;;  %s1251_s27 = int_to_ptr.vmem [resolvable:$false] %s1250_s27 }
  0x21   : > { %s1252_s28 = scalar_lea.vmem %s1251_s27, 16384  ;;  %p1253_p2 = scmp.lt.s32.totalorder %s1425_s6, %s1251_s27 }
  0x22   : > { %p1248_p9 = pnand %p1246_p10, %p1234_p1  ;;  %p1254_p12 = scmp.lt.s32.totalorder %s1252_s28, %s1245_s22 }
  0x24   : > { %p1249_p0 = pneg %p1248_p9  ;;  %p1255_p11 = por %p1254_p12, %p1253_p2 }
  0x26   : > { %p1256_p6 = pnand %p1255_p11, %p1249_p0 }
  0x28   : > { %1259 = shalt.err (!%p1256_p6)
}
  0x29   : > { %s1327_s29 = smov 256   ;;  %s1328_s30 = smov 16  }
  0x2a   : > { %1183 = dma.hbm_to_vmem [thread:$0]  (!%p1421_p13), %s1417_s4, 8192, %s1425_s6, %s1427_s8, %s1327_s29, %s1327_s29, %s1328_s30  }
  0x2b   : > { %p1124_p9 = scmp.ge.s32.totalorder %s1324_s15, 1  ;;  %p157_p1 = scmp.lt.s32.totalorder %s1324_s15, 3 }
  0x2d   : > { %p158_p3 = pnand %p1124_p9, %p157_p1 }
  0x2f   : > { %161 = sbr.rel (%p158_p3) target bundleno = 882 (0x372), region = 32 }
  0x34   : > { %s1451_s5 = sand.u32 1, %s1316_s13   ;;  %p2094_p6 = scmp.ne.s32.totalorder %s2090_s23, 0 }
  0x35   : > { %s1125_s9 = sshll.u32 %s1451_s5, 9  ;;  %s164_s10 = scalar_lea.sflag [#allocation3], %s1451_s5 }
  0x36   : > { %s1457_s11 = scalar_lea.vmem [#allocation2], %s1125_s9 }
  0x37   : > { %1303 = dma.done.wait (%p2094_p6), %s164_s10, 8192  }
  0x38   : > { %1305 = vsyncadd (%p2094_p6), %s164_s10, 4294959104  ;;  %v1464_v0 = vld [vmem:[%s1457_s11 + $0x80] sm:$0xff]  ;;  %v1467_v1 = vld [vmem:[%s1457_s11 + $0x88] sm:$0xff]  ;;  %vm1330_vm0 = vmmov 0   ;;  %vm435_vm1 = vcmask 130112   ;;  %vm442_vm2 = vcmask 195712  }
  0x39   : > { %v1470_v2 = vld [vmem:[%s1457_s11] sm:$0xff]  ;;  %v280_v3 = vadd.f32 %v1467_v1, %v1464_v0  ;;  %v1475_v4 = vld [vmem:[%s1457_s11 + $0x8] sm:$0xff]  ;;  %v1478_v5 = vld [vmem:[%s1457_s11 + $0x90] sm:$0xff]  ;;  %vm449_vm3 = vcmask 261312   ;;  %vm456_vm4 = vcmask 326912   ;;  %vm463_vm5 = vcmask 392512  }
  0x3a   : > { %2095 = vst [vmem:[#allocation8_spill] sm:$0xff] %v1478_v5  ;;  %v1481_v6 = vld [vmem:[%s1457_s11 + $0x98] sm:$0xff]  ;;  %v256_v7 = vadd.f32 %v1475_v4, %v1470_v2  ;;  %v1486_v8 = vld [vmem:[%s1457_s11 + $0x10] sm:$0xff]  ;;  %v1496_v12 = vld [vmem:[%s1457_s11 + $0xa0] sm:$0xff]  ;;  %vm470_vm6 = vcmask 458112   ;;  %vm477_vm7 = vcmask 523712  }
  0x3b   : > { %2096 = vst [vmem:[#allocation9_spill] sm:$0xff] %v1481_v6  ;;  %v1489_v9 = vld [vmem:[%s1457_s11 + $0x18] sm:$0xff]  ;;  %281 = vadd.xlane.f32.xlu1 %v280_v3  ;;  %v283_v10 = vadd.f32 %v1481_v6, %v1478_v5  ;;  %v1499_v13 = vld [vmem:[%s1457_s11 + $0xa8] sm:$0xff]  ;;  %v1502_v14 = vld [vmem:[%s1457_s11 + $0x20] sm:$0xff]  ;;  %vm596_vm8 = vcmask 1041409   ;;  %vm598_vm9 = vcmask 1042434  }
  0x3c   : > { %257 = vadd.xlane.f32.xlu0 %v256_v7  ;;  %v259_v11 = vadd.f32 %v1489_v9, %v1486_v8  ;;  %2097 = vst [vmem:[#allocation10_spill] sm:$0xff] %v1499_v13  ;;  %v1505_v15 = vld [vmem:[%s1457_s11 + $0x28] sm:$0xff]  ;;  %v286_v16 = vadd.f32 %v1499_v13, %v1496_v12  ;;  %v1512_v18 = vld [vmem:[%s1457_s11 + $0x110] sm:$0xff]  ;;  %v1515_v19 = vld [vmem:[%s1457_s11 + $0x118] sm:$0xff]  ;;  %vm600_vm10 = vcmask 1043459   ;;  %vm602_vm11 = vcmask 523264  }
  0x3d   : > { %v262_v17 = vadd.f32 %v1505_v15, %v1502_v14  ;;  %2098 = vst [vmem:[#allocation11_spill] sm:$0xff] %v1512_v18  ;;  %2099 = vst [vmem:[#allocation12_spill] sm:$0xff] %v1515_v19  ;;  %v1518_v20 = vld [vmem:[%s1457_s11 + $0x100] sm:$0xff]  ;;  %v1521_v21 = vld [vmem:[%s1457_s11 + $0x108] sm:$0xff]  ;;  %v307_v22 = vadd.f32 %v1515_v19, %v1512_v18  ;;  %vm681_vm12 = vcmask 1043456   ;;  %vm677_vm13 = vcmask 31744  }
  0x3e   : > { %2100 = vst [vmem:[#allocation13_spill] sm:$0xff] %v1518_v20  ;;  %2101 = vst [vmem:[#allocation14_spill] sm:$0xff] %v1521_v21  ;;  %v304_v23 = vadd.f32 %v1521_v21, %v1518_v20  ;;  %v1528_v24 = vld [vmem:[%s1457_s11 + $0xb0] sm:$0xff]  ;;  %v1531_v25 = vld [vmem:[%s1457_s11 + $0xb8] sm:$0xff]  ;;  %s1862_s6 = scalar_lea.vmem [#allocation5], %s1125_s9  ;;  %s1140_s9 = sshll.u32 %s1375_s16, 13 }
  0x3f   : > { %284 = vadd.xlane.f32.xlu1 %v283_v10  ;;  %2102 = vst [vmem:[#allocation15_spill] sm:$0xff] %v1528_v24  ;;  %2103 = vst [vmem:[#allocation16_spill] sm:$0xff] %v1531_v25  ;;  %v1534_v26 = vld [vmem:[%s1457_s11 + $0x30] sm:$0xff]  ;;  %v1537_v27 = vld [vmem:[%s1457_s11 + $0x38] sm:$0xff]  ;;  %v289_v28 = vadd.f32 %v1531_v25, %v1528_v24  ;;  %s1044_s7 = sshll.u32 %s1862_s6, 4  ;;  %s1989_s19 = scalar_lea.hbm %s2041_s3, %s1140_s9  ;;  %s1991_s7 = int_to_ptr.vmem [resolvable:$true] %s1044_s7 }
  0x40   : > { %260 = vadd.xlane.f32.xlu0 %v259_v11  ;;  %v265_v29 = vadd.f32 %v1537_v27, %v1534_v26  ;;  %v1544_v30 = vld [vmem:[%s1457_s11 + $0x180] sm:$0xff]  ;;  %v1547_v31 = vld [vmem:[%s1457_s11 + $0x188] sm:$0xff]  ;;  %v1566_v38 = vld [vmem:[%s1457_s11 + $0x190] sm:$0xff]  ;;  %s1030_s16 = scalar_lea.sflag [#allocation4], %s1451_s5  ;;  %s1260_s20 = scalar_lea.vmem %s1991_s7, 8192 }
  0x41   : > { %2104 = vst [vmem:[#allocation17_spill] sm:$0xff] %v1544_v30  ;;  %2105 = vst [vmem:[#allocation18_spill] sm:$0xff] %v1547_v31  ;;  %v1550_v32 = vld [vmem:[%s1457_s11 + $0x120] sm:$0xff]  ;;  %v1553_v33 = vld [vmem:[%s1457_s11 + $0x128] sm:$0xff]  ;;  %v328_v34 = vadd.f32 %v1547_v31, %v1544_v30  ;;  %v424_v30 = vlaneseq  ;;  %p1261_p11 = scmp.ne.s32.totalorder %s1991_s7, %s1260_s20  ;;  %p2185_p12 = scmp.ne.s32.totalorder %s2091_s24, 0 }
  0x42   : > { %2106 = vst [vmem:[#allocation19_spill] sm:$0xff] %v1550_v32  ;;  %2107 = vst [vmem:[#allocation20_spill] sm:$0xff] %v1553_v33  ;;  %v310_v35 = vadd.f32 %v1553_v33, %v1550_v32  ;;  %v1560_v36 = vld [vmem:[%s1457_s11 + $0x40] sm:$0xff]  ;;  %v1563_v37 = vld [vmem:[%s1457_s11 + $0x48] sm:$0xff]  ;;  %s1331_s22 = smov [#allocation5]  }
  0x43   : > { %287 = vadd.xlane.f32.xlu1 %v286_v16  ;;  %2108 = vst [vmem:[#allocation21_spill] sm:$0xff] %v1566_v38  ;;  %v1569_v39 = vld [vmem:[%s1457_s11 + $0x198] sm:$0xff]  ;;  %v268_v40 = vadd.f32 %v1563_v37, %v1560_v36  ;;  %v1576_v42 = vld [vmem:[%s1457_s11 + $0x130] sm:$0xff]  ;;  %v1582_v44 = vld [vmem:[%s1457_s11 + $0xc0] sm:$0xff]  ;;  %p1262_p13 = pnand %p1261_p11, %p2185_p12  ;;  %s1264_s26 = sshll.u32 %s1331_s22, 4  ;;  %s1265_s26 = int_to_ptr.vmem [resolvable:$false] %s1264_s26 }
  0x44   : > { %263 = vadd.xlane.f32.xlu0 %v262_v17  ;;  %2109 = vst [vmem:[#allocation22_spill] sm:$0xff] %v1569_v39  ;;  %v331_v41 = vadd.f32 %v1569_v39, %v1566_v38  ;;  %2110 = vst [vmem:[#allocation23_spill] sm:$0xff] %v1576_v42  ;;  %v1579_v43 = vld [vmem:[%s1457_s11 + $0x138] sm:$0xff]  ;;  %v1585_v45 = vld [vmem:[%s1457_s11 + $0xc8] sm:$0xff]  ;;  %s1266_s27 = scalar_lea.vmem %s1265_s26, 16384  ;;  %p1267_p5 = scmp.lt.s32.totalorder %s1991_s7, %s1265_s26 }
  0x45   : > { %2111 = vst [vmem:[#allocation24_spill] sm:$0xff] %v1579_v43  ;;  %2112 = vst [vmem:[#allocation25_spill] sm:$0xff] %v1582_v44  ;;  %v313_v46 = vadd.f32 %v1579_v43, %v1576_v42  ;;  %v292_v47 = vadd.f32 %v1585_v45, %v1582_v44  ;;  %v1592_v48 = vld [vmem:[%s1457_s11 + $0x50] sm:$0xff]  ;;  %v1595_v49 = vld [vmem:[%s1457_s11 + $0x58] sm:$0xff]  ;;  %p1263_p4 = pneg %p1262_p13  ;;  %p1268_p7 = scmp.lt.s32.totalorder %s1266_s27, %s1260_s20 }
  0x46   : > { %2113 = vst [vmem:[#allocation26_spill] sm:$0xff] %v1585_v45  ;;  %v1598_v50 = vld [vmem:[%s1457_s11 + $0x1a0] sm:$0xff]  ;;  %v1601_v51 = vld [vmem:[%s1457_s11 + $0x1a8] sm:$0xff]  ;;  %v271_v52 = vadd.f32 %v1595_v49, %v1592_v48  ;;  %v1614_v56 = vld [vmem:[%s1457_s11 + $0xd0] sm:$0xff] }
  0x47   : > { %308 = vadd.xlane.f32.xlu1 %v307_v22  ;;  %2114 = vst [vmem:[#allocation27_spill] sm:$0xff] %v1598_v50  ;;  %2115 = vst [vmem:[#allocation28_spill] sm:$0xff] %v1601_v51  ;;  %v334_v53 = vadd.f32 %v1601_v51, %v1598_v50  ;;  %v1608_v54 = vld [vmem:[%s1457_s11 + $0x140] sm:$0xff]  ;;  %v1611_v55 = vld [vmem:[%s1457_s11 + $0x148] sm:$0xff]  ;;  %p1269_p8 = por %p1268_p7, %p1267_p5 }
  0x48   : > { %305 = vadd.xlane.f32.xlu0 %v304_v23  ;;  %2116 = vst [vmem:[#allocation29_spill] sm:$0xff] %v1608_v54  ;;  %2117 = vst [vmem:[#allocation30_spill] sm:$0xff] %v1611_v55  ;;  %v1617_v57 = vld [vmem:[%s1457_s11 + $0xd8] sm:$0xff]  ;;  %v316_v58 = vadd.f32 %v1611_v55, %v1608_v54  ;;  %v1624_v60 = vld [vmem:[%s1457_s11 + $0x60] sm:$0xff] }
  0x49   : > { %2118 = vst [vmem:[#allocation31_spill] sm:$0xff] %v1614_v56  ;;  %2119 = vst [vmem:[#allocation32_spill] sm:$0xff] %v1617_v57  ;;  %v295_v59 = vadd.f32 %v1617_v57, %v1614_v56  ;;  %v1627_v61 = vld [vmem:[%s1457_s11 + $0x68] sm:$0xff]  ;;  %v1630_v62 = vld [vmem:[%s1457_s11 + $0x1b0] sm:$0xff]  ;;  %p1270_p10 = pnand %p1269_p8, %p1263_p4 }
  0x4a   : > { %2120 = vst [vmem:[#allocation33_spill] sm:$0xff] %v1630_v62  ;;  %v1633_v63 = vld [vmem:[%s1457_s11 + $0x1b8] sm:$0xff]  ;;  %v274_v3 = vadd.f32 %v1627_v61, %v1624_v60  ;;  %v1640_v10 = vld [vmem:[%s1457_s11 + $0x150] sm:$0xff]  ;;  %v1646_v16 = vld [vmem:[%s1457_s11 + $0xe0] sm:$0xff] }
  0x4b   : > { %290 = vadd.xlane.f32.xlu1 %v289_v28  ;;  %2121 = vst [vmem:[#allocation34_spill] sm:$0xff] %v1633_v63  ;;  %v337_v7 = vadd.f32 %v1633_v63, %v1630_v62  ;;  %2122 = vst [vmem:[#allocation35_spill] sm:$0xff] %v1640_v10  ;;  %v1643_v11 = vld [vmem:[%s1457_s11 + $0x158] sm:$0xff]  ;;  %v1649_v17 = vld [vmem:[%s1457_s11 + $0xe8] sm:$0xff] }
  0x4c   : > { %266 = vadd.xlane.f32.xlu0 %v265_v29  ;;  %2123 = vst [vmem:[#allocation36_spill] sm:$0xff] %v1643_v11  ;;  %2124 = vst [vmem:[#allocation37_spill] sm:$0xff] %v1646_v16  ;;  %v319_v22 = vadd.f32 %v1643_v11, %v1640_v10  ;;  %v298_v23 = vadd.f32 %v1649_v17, %v1646_v16  ;;  %v1656_v28 = vld [vmem:[%s1457_s11 + $0x70] sm:$0xff]  ;;  %v1659_v29 = vld [vmem:[%s1457_s11 + $0x78] sm:$0xff] }
  0x4d   : > { %2125 = vst [vmem:[#allocation38_spill] sm:$0xff] %v1649_v17  ;;  %v1707_v62 = vld [vmem:[%s1457_s11 + $0x1f8] sm:$0xff] }
  0x4e   : > { %2137 = vst [vmem:[#allocation50_spill] sm:$0xff] %v1707_v62 }
  0x4f   : > { %329 = vadd.xlane.f32.xlu1 %v328_v34  ;;  %v1662_v34 = vld [vmem:[%s1457_s11 + $0x1c0] sm:$0xff] }
  0x50   : > { %311 = vadd.xlane.f32.xlu0 %v310_v35  ;;  %2126 = vst [vmem:[#allocation39_spill] sm:$0xff] %v1662_v34  ;;  %v1665_v35 = vld [vmem:[%s1457_s11 + $0x1c8] sm:$0xff] }
  0x51   : > { %2127 = vst [vmem:[#allocation40_spill] sm:$0xff] %v1665_v35 }
  0x53   : > { %269 = vadd.xlane.f32.xlu1 %v268_v40  ;;  %v277_v40 = vadd.f32 %v1659_v29, %v1656_v28 }
  0x54   : > { %332 = vadd.xlane.f32.xlu0 %v331_v41  ;;  %v340_v41 = vadd.f32 %v1665_v35, %v1662_v34  ;;  %v1710_v35 = vld [vmem:[%s1457_s11 + $0x1e0] sm:$0xff]  ;;  %v1713_v34 = vld [vmem:[%s1457_s11 + $0x1e8] sm:$0xff] }
  0x55   : > { %2138 = vst [vmem:[#allocation51_spill] sm:$0xff] %v1710_v35  ;;  %2139 = vst [vmem:[#allocation52_spill] sm:$0xff] %v1713_v34 }
  0x57   : > { %314 = vadd.xlane.f32.xlu1 %v313_v46  ;;  %v1672_v46 = vld [vmem:[%s1457_s11 + $0x160] sm:$0xff] }
  0x58   : > { %293 = vadd.xlane.f32.xlu0 %v292_v47  ;;  %2128 = vst [vmem:[#allocation41_spill] sm:$0xff] %v1672_v46  ;;  %v1675_v47 = vld [vmem:[%s1457_s11 + $0x168] sm:$0xff] }
  0x59   : > { %2129 = vst [vmem:[#allocation42_spill] sm:$0xff] %v1675_v47 }
  0x5b   : > { %272 = vadd.xlane.f32.xlu1 %v271_v52  ;;  %v1678_v52 = vld [vmem:[%s1457_s11 + $0xf0] sm:$0xff] }
  0x5c   : > { %335 = vadd.xlane.f32.xlu0 %v334_v53  ;;  %2130 = vst [vmem:[#allocation43_spill] sm:$0xff] %v1678_v52  ;;  %v1681_v53 = vld [vmem:[%s1457_s11 + $0xf8] sm:$0xff] }
  0x5d   : > { %2131 = vst [vmem:[#allocation44_spill] sm:$0xff] %v1681_v53 }
  0x5f   : > { %317 = vadd.xlane.f32.xlu1 %v316_v58  ;;  %v322_v58 = vadd.f32 %v1675_v47, %v1672_v46  ;;  %v1747_v47 = vshrl.u32 %v424_v30, 7 }
  0x60   : > { %296 = vadd.xlane.f32.xlu0 %v295_v59  ;;  %v301_v59 = vadd.f32 %v1681_v53, %v1678_v52 }
  0x63   : > { %275 = vadd.xlane.f32.xlu1 %v274_v3  ;;  %v1688_v3 = vld [vmem:[%s1457_s11 + $0x170] sm:$0xff] }
  0x64   : > { %338 = vadd.xlane.f32.xlu0 %v337_v7  ;;  %2132 = vst [vmem:[#allocation45_spill] sm:$0xff] %v1688_v3  ;;  %v1691_v7 = vld [vmem:[%s1457_s11 + $0x178] sm:$0xff] }
  0x65   : > { %2133 = vst [vmem:[#allocation46_spill] sm:$0xff] %v1691_v7  ;;  %v325_v63 = vadd.f32 %v1691_v7, %v1688_v3 }
  0x67   : > { %320 = vadd.xlane.f32.xlu1 %v319_v22  ;;  %v1694_v22 = vld [vmem:[%s1457_s11 + $0x1d0] sm:$0xff] }
  0x68   : > { %299 = vadd.xlane.f32.xlu0 %v298_v23  ;;  %2134 = vst [vmem:[#allocation47_spill] sm:$0xff] %v1694_v22  ;;  %v1697_v23 = vld [vmem:[%s1457_s11 + $0x1d8] sm:$0xff] }
  0x69   : > { %2135 = vst [vmem:[#allocation48_spill] sm:$0xff] %v1697_v23 }
  0x6b   : > { %278 = vadd.xlane.f32.xlu1 %v277_v40  ;;  %v343_v40 = vadd.f32 %v1697_v23, %v1694_v22  ;;  %v391_v23 = vld [vmem:[%s2039_s1 + $0x38] sm:$0xff] }
  0x6c   : > { %341 = vadd.xlane.f32.xlu0 %v340_v41  ;;  %v1704_v41 = vld [vmem:[%s1457_s11 + $0x1f0] sm:$0xff] }
  0x6d   : > { %2136 = vst [vmem:[#allocation49_spill] sm:$0xff] %v1704_v41  ;;  %v349_v39 = vadd.f32 %v1707_v62, %v1704_v41 }
  0x6f   : > { %323 = vadd.xlane.f32.xlu1 %v322_v58  ;;  %v346_v58 = vadd.f32 %v1713_v34, %v1710_v35 }
  0x70   : > { %302 = vadd.xlane.f32.xlu0 %v301_v59  ;;  %v1329_v59 = vmov 0.0  }
  0x71   : > { %1152 = vmatprep.subr.mxu0 %v1329_v59  ;;  %1171 = vmatprep.subr.mxu1 %v1329_v59 }
  0x72   : > { %1153 = vmatpush3.msra.mxu0 %v391_v23  ;;  %v387_v23 = vld [vmem:[%s2039_s1 + $0x18] sm:$0xff]  ;;  %1168 = vmatprep.mubr.msk.f32.mxu0 %vm1330_vm0, %v1329_v59 }
  0x73   : > { %326 = vadd.xlane.f32.xlu1 %v325_v63  ;;  %1154 = vmatprep.subr.mxu0 %v1329_v59  ;;  %v390_v63 = vld [vmem:[%s2039_s1 + $0x30] sm:$0xff] }
  0x74   : > { %344 = vadd.xlane.f32.xlu0 %v343_v40  ;;  %1155 = vmatpush3.msra.mxu0 %v390_v63  ;;  %v388_v40 = vld [vmem:[%s2039_s1 + $0x20] sm:$0xff]  ;;  %v385_v63 = vld [vmem:[%s2039_s1 + $0x8] sm:$0xff] }
  0x75   : > { %1156 = vmatprep.subr.mxu0 %v1329_v59  ;;  %1173 = vmatprep.mubr.msk.f32.mxu1 %vm1330_vm0, %v1329_v59 }
  0x77   : > { %350 = vadd.xlane.f32.xlu1 %v349_v39  ;;  %v389_v39 = vld [vmem:[%s2039_s1 + $0x28] sm:$0xff] }
  0x78   : > { %347 = vadd.xlane.f32.xlu0 %v346_v58  ;;  %1157 = vmatpush3.msra.mxu0 %v389_v39  ;;  %v386_v58 = vld [vmem:[%s2039_s1 + $0x10] sm:$0xff]  ;;  %v384_v39 = vld [vmem:[%s2039_s1] sm:$0xff] }
  0x79   : > { %1158 = vmatprep.subr.mxu0 %v1329_v59 }
  0x7a   : > { %1159 = vmatpush3.msra.mxu0 %v388_v40 }
  0x7b   : > { %1160 = vmatprep.subr.mxu0 %v1329_v59 }
  0x7c   : > { %1161 = vmatpush3.msra.mxu0 %v387_v23 }
  0x7d   : > { %1162 = vmatprep.subr.mxu0 %v1329_v59 }
  0x7e   : > { %1163 = vmatpush3.msra.mxu0 %v386_v58 }
  0x7f   : > { %1164 = vmatprep.subr.mxu0 %v1329_v59 }
  0x80   : > { %1165 = vmatpush3.msra.mxu0 %v385_v63 }
  0x81   : > { %1166 = vmatprep.subr.mxu0 %v1329_v59  ;;  %v425_v59 = vand.u32 127, %v424_v30 }
  0x82   : > { %1167 = vmatpush3.msra.mxu0 %v384_v39 }
  0x83   : > { %v430_v46 = vadd.s32 4294967288, %v425_v59  ;;  %v437_v43 = vadd.s32 4294967280, %v425_v59  ;;  %v444_v55 = vadd.s32 4294967272, %v425_v59  ;;  %v451_v54 = vadd.s32 4294967264, %v425_v59 }
  0x84   : > { %v1754_v18 = vsub.s32 %v425_v59, %v1747_v47  ;;  %v458_v30 = vadd.s32 4294967256, %v425_v59  ;;  %v465_v53 = vadd.s32 4294967248, %v425_v59 }
  0x85   : > { %v1757_v33 = vsub.s32 %v430_v46, %v1747_v47  ;;  %v1760_v32 = vsub.s32 %v437_v43, %v1747_v47  ;;  %v1765_v20 = vsub.s32 %v444_v55, %v1747_v47  ;;  %v1768_v57 = vsub.s32 %v451_v54, %v1747_v47 }
  0x86   : > { %v1776_v55 = vsub.s32 %v465_v53, %v1747_v47 }
  0xc4   : > { %v282_v40 = vpop.xlane.xlu1 %281 }
  0xc5   : > { %v258_v23 = vpop.xlane.xlu0 %257  ;;  %v360_v46 = vmul.f32 0.00390625, %v282_v40 }
  0xc6   : > { %v352_v44 = vmul.f32 0.00390625, %v258_v23 }
  0xc8   : > { %v285_v62 = vpop.xlane.xlu1 %284 }
  0xc9   : > { %v261_v41 = vpop.xlane.xlu0 %260  ;;  %v361_v21 = vmul.f32 0.00390625, %v285_v62  ;;  %v1773_v62 = vsub.s32 %v458_v30, %v1747_v47 }
  0xca   : > { %v353_v17 = vmul.f32 0.00390625, %v261_v41 }
  0xcb   : > { %v486_v5 = vrot.slane %v361_v21, %v1757_v33  ;;  %v429_v21 = vrot.slane %v352_v44, %v1754_v18 }
  0xcc   : > { %v288_v58 = vpop.xlane.xlu1 %287 }
  0xcd   : > { %v264_v22 = vpop.xlane.xlu0 %263  ;;  %v362_v16 = vmul.f32 0.00390625, %v288_v58  ;;  %v472_v58 = vadd.s32 4294967240, %v425_v59 }
  0xce   : > { %v354_v43 = vmul.f32 0.00390625, %v264_v22  ;;  %v482_v22 = vrot.slane %v360_v46, %v1754_v18 }
  0xd0   : > { %v309_v34 = vpop.xlane.xlu1 %308 }
  0xd1   : > { %v306_v35 = vpop.xlane.xlu0 %305  ;;  %v369_v25 = vmul.f32 0.00390625, %v309_v34  ;;  %v434_v34 = vrot.slane %v353_v17, %v1757_v33  ;;  %v487_v17 = vsel %vm435_vm1, %v486_v5, %v482_v22 }
  0xd2   : > { %v368_v24 = vmul.f32 0.00390625, %v306_v35  ;;  %v441_v35 = vrot.slane %v354_v43, %v1760_v32 }
  0xd3   : > { %v525_v23 = vrot.slane %v369_v25, %v1757_v33 }
  0xd4   : > { %v291_v38 = vpop.xlane.xlu1 %290  ;;  %v521_v53 = vrot.slane %v368_v24, %v1754_v18  ;;  %v436_v24 = vsel %vm435_vm1, %v434_v34, %v429_v21 }
  0xd5   : > { %v267_v51 = vpop.xlane.xlu0 %266  ;;  %v363_v45 = vmul.f32 0.00390625, %v291_v38  ;;  %v491_v38 = vrot.slane %v362_v16, %v1760_v32 }
  0xd6   : > { %v355_v6 = vmul.f32 0.00390625, %v267_v51 }
  0xd7   : > { %v496_v30 = vrot.slane %v363_v45, %v1765_v20  ;;  %v492_v45 = vsel %vm442_vm2, %v491_v38, %v487_v17 }
  0xd8   : > { %v330_v63 = vpop.xlane.xlu1 %329 }
  0xd9   : > { %v312_v50 = vpop.xlane.xlu0 %311  ;;  %v497_v5 = vsel %vm449_vm3, %v496_v30, %v492_v45 }
  0xda   : > { %v370_v13 = vmul.f32 0.00390625, %v312_v50  ;;  %v448_v50 = vrot.slane %v355_v6, %v1765_v20  ;;  %v1795_v6 = vsub.s32 %v472_v58, %v1747_v47 }
  0xdc   : > { %v270_v7 = vpop.xlane.xlu1 %269  ;;  %v530_v16 = vrot.slane %v370_v13, %v1760_v32 }
  0xdd   : > { %v333_v3 = vpop.xlane.xlu0 %332  ;;  %v356_v40 = vmul.f32 0.00390625, %v270_v7  ;;  %v376_v7 = vmul.f32 0.00390625, %v330_v63  ;;  %v526_v63 = vsel %vm435_vm1, %v525_v23, %v521_v53 }
  0xde   : > { %v377_v51 = vmul.f32 0.00390625, %v333_v3  ;;  %v531_v58 = vsel %vm442_vm2, %v530_v16, %v526_v63 }
  0xdf   : > { %v455_v3 = vrot.slane %v356_v40, %v1768_v57  ;;  %v560_v40 = vrot.slane %v376_v7, %v1754_v18 }
  0xe0   : > { %v315_v31 = vpop.xlane.xlu1 %314  ;;  %v564_v44 = vrot.slane %v377_v51, %v1757_v33 }
  0xe1   : > { %v294_v11 = vpop.xlane.xlu0 %293  ;;  %v371_v59 = vmul.f32 0.00390625, %v315_v31  ;;  %v443_v31 = vsel %vm442_vm2, %v441_v35, %v436_v24 }
  0xe2   : > { %v364_v43 = vmul.f32 0.00390625, %v294_v11  ;;  %v450_v11 = vsel %vm449_vm3, %v448_v50, %v443_v31 }
  0xe3   : > { %v535_v22 = vrot.slane %v371_v59, %v1765_v20  ;;  %v457_v38 = vsel %vm456_vm4, %v455_v3, %v450_v11 }
  0xe4   : > { %v1743_v10 = vpop.xlane.xlu1 %272  ;;  %v501_v51 = vrot.slane %v364_v43, %v1768_v57 }
  0xe5   : > { %v1745_v39 = vpop.xlane.xlu0 %335  ;;  %v357_v13 = vmul.f32 0.00390625, %v1743_v10  ;;  %v565_v10 = vsel %vm435_vm1, %v564_v44, %v560_v40  ;;  %v536_v59 = vsel %vm449_vm3, %v535_v22, %v531_v58 }
  0xe6   : > { %v378_v53 = vmul.f32 0.00390625, %v1745_v39  ;;  %v502_v39 = vsel %vm456_vm4, %v501_v51, %v497_v5 }
  0xe8   : > { %v1749_v42 = vpop.xlane.xlu1 %317 }
  0xe9   : > { %v1751_v19 = vpop.xlane.xlu0 %296  ;;  %v372_v34 = vmul.f32 0.00390625, %v1749_v42  ;;  %v462_v42 = vrot.slane %v357_v13, %v1773_v62 }
  0xea   : > { %v365_v35 = vmul.f32 0.00390625, %v1751_v19 }
  0xeb   : > { %v540_v19 = vrot.slane %v372_v34, %v1768_v57  ;;  %v464_v63 = vsel %vm463_vm5, %v462_v42, %v457_v38 }
  0xec   : > { %v1762_v52 = vpop.xlane.xlu1 %275 }
  0xed   : > { %v1770_v56 = vpop.xlane.xlu0 %338  ;;  %v358_v17 = vmul.f32 0.00390625, %v1762_v52  ;;  %v541_v13 = vsel %vm456_vm4, %v540_v19, %v536_v59 }
  0xee   : > { %v379_v21 = vmul.f32 0.00390625, %v1770_v56  ;;  %v569_v56 = vrot.slane %v378_v53, %v1760_v32 }
  0xf0   : > { %v321_v54 = vpop.xlane.xlu1 %320  ;;  %v574_v52 = vrot.slane %v379_v21, %v1765_v20  ;;  %v570_v38 = vsel %vm442_vm2, %v569_v56, %v565_v10 }
  0xf1   : > { %v300_v41 = vpop.xlane.xlu0 %299  ;;  %v373_v18 = vmul.f32 0.00390625, %v321_v54  ;;  %v506_v54 = vrot.slane %v365_v35, %v1773_v62 }
  0xf2   : > { %v366_v30 = vmul.f32 0.00390625, %v300_v41 }
  0xf3   : > { %v545_v45 = vrot.slane %v373_v18, %v1773_v62  ;;  %v507_v22 = vsel %vm463_vm5, %v506_v54, %v502_v39 }
  0xf4   : > { %v279_v46 = vpop.xlane.xlu1 %278  ;;  %v511_v44 = vrot.slane %v366_v30, %v1776_v55 }
  0xf5   : > { %v342_v25 = vpop.xlane.xlu0 %341  ;;  %v359_v41 = vmul.f32 0.00390625, %v279_v46  ;;  %v469_v46 = vrot.slane %v358_v17, %v1776_v55  ;;  %v546_v51 = vsel %vm463_vm5, %v545_v45, %v541_v13 }
  0xf6   : > { %v380_v16 = vmul.f32 0.00390625, %v342_v25  ;;  %v512_v35 = vsel %vm470_vm6, %v511_v44, %v507_v22  ;;  %v763_v44 = vsub.s32 0, %v1747_v47 }
  0xf7   : > { %v476_v34 = vrot.slane %v359_v41, %v1795_v6  ;;  %v471_v42 = vsel %vm470_vm6, %v469_v46, %v464_v63  ;;  %v868_v46 = vsub.s32 3, %v1747_v47 }
  0xf8   : > { %v324_v33 = vpop.xlane.xlu1 %323  ;;  %v579_v11 = vrot.slane %v380_v16, %v1768_v57  ;;  %v575_v57 = vsel %vm449_vm3, %v574_v52, %v570_v38  ;;  %v798_v52 = vsub.s32 1, %v1747_v47 }
  0xf9   : > { %v303_v23 = vpop.xlane.xlu0 %302  ;;  %v374_v50 = vmul.f32 0.00390625, %v324_v33 }
  0xfa   : > { %v367_v7 = vmul.f32 0.00390625, %v303_v23 }
  0xfb   : > { %v550_v25 = vrot.slane %v374_v50, %v1776_v55  ;;  %v478_v50 = vsel %vm477_vm7, %v476_v34, %v471_v42 }
  0xfc   : > { %v327_v3 = vpop.xlane.xlu1 %326  ;;  %v516_v5 = vrot.slane %v367_v7, %v1795_v6 }
  0xfd   : > { %v375_v43 = vmul.f32 0.00390625, %v327_v3  ;;  %v345_v24 = vpop.xlane.xlu0 %344  ;;  %v551_v53 = vsel %vm470_vm6, %v550_v25, %v546_v51 }
  0xfe   : > { %v381_v31 = vmul.f32 0.00390625, %v345_v24  ;;  %v517_v18 = vsel %vm477_vm7, %v516_v5, %v512_v35  ;;  %v833_v5 = vsub.s32 2, %v1747_v47 }
  0xff   : > { %v555_v32 = vrot.slane %v375_v43, %v1795_v6  ;;  %v597_v19 = vsel %vm596_vm8, %v517_v18, %v478_v50  ;;  %v2143_v50 = vld [vmem:[#allocation25_spill] sm:$0xff] }
 0x100   : > { %v351_v40 = vpop.xlane.xlu1 %350  ;;  %v584_v33 = vrot.slane %v381_v31, %v1773_v62  ;;  %v580_v62 = vsel %vm456_vm4, %v579_v11, %v575_v57 }
 0x101   : > { %v348_v20 = vpop.xlane.xlu0 %347  ;;  %v383_v58 = vmul.f32 0.00390625, %v351_v40  ;;  %v556_v21 = vsel %vm477_vm7, %v555_v32, %v551_v53 }
 0x102   : > { %v382_v23 = vmul.f32 0.00390625, %v348_v20  ;;  %v585_v7 = vsel %vm463_vm5, %v584_v33, %v580_v62  ;;  %v599_v17 = vsel %vm598_vm9, %v556_v21, %v597_v19  ;;  %v2141_v62 = vld [vmem:[#allocation8_spill] sm:$0xff] }
 0x103   : > { %v594_v30 = vrot.slane %v383_v58, %v1795_v6 }
 0x104   : > { %v589_v10 = vrot.slane %v382_v23, %v1776_v55  ;;  %v676_v55 = vld [vmem:[%s2040_s2] sm:$0xf] }
 0x105   : > { %1172 = vmatpush3.msk.msra.mxu1 %vm681_vm12, %v676_v55 }
 0x106   : > { %v590_v59 = vsel %vm470_vm6, %v589_v10, %v585_v7  ;;  %v2142_v10 = vld [vmem:[#allocation9_spill] sm:$0xff]  ;;  %v2144_v7 = vld [vmem:[#allocation26_spill] sm:$0xff] }
 0x107   : > { %v595_v6 = vsel %vm477_vm7, %v594_v30, %v590_v59  ;;  %v2140_v30 = vld [vmem:[#allocation10_spill] sm:$0xff] }
 0x108   : > { %v601_v16 = vsel %vm600_vm10, %v595_v6, %v599_v17  ;;  %v2145_v6 = vld [vmem:[#allocation15_spill] sm:$0xff] }
 0x109   : > { %1169 = vmatmul.mubr.msk.f32.vlgmr.msra.gmra.mxu0 %vm602_vm11, %v601_v16  ;;  %v2146_v16 = vld [vmem:[#allocation16_spill] sm:$0xff] }
 0x1c9   : > { %v671_v3 = vpop.f32.mrf.mxu0 }
 0x1ca   : > { %v675_v39 = vmax.f32 %v671_v3, 0.0  ;;  %v2147_v3 = vld [vmem:[#allocation37_spill] sm:$0xff] }
 0x1cb   : > { %v1170_v54 = vpop.f32.mrf.mxu0 }
 0x1cc   : > { %1174 = vmatmul.mubr.msk.f32.vlgmr.msra.gmra.mxu1 %vm677_vm13, %v675_v39  ;;  %v2148_v54 = vld [vmem:[#allocation38_spill] sm:$0xff] }
 0x28c   : > { %v751_v41 = vpop.f32.mrf.mxu1 }
 0x28d   : > { %v1130_v43 = vmul.f32 -1.442695, %v751_v41 }
 0x28e   : > { %v1175_v24 = vpop.f32.mrf.mxu1 }
 0x28f   : > { %1228 = vpow2.f32 %v1130_v43 }
 0x29c   : > { %v1229_v56 = vpop.eup %1228 }
 0x29d   : > { %v758_v45 = vadd.f32 1.0, %v1229_v56  ;;  %v2149_v56 = vld [vmem:[#allocation31_spill] sm:$0xff] }
 0x29f   : > { %1230 = vrcp.f32 %v758_v45 }
 0x2ac   : > { %v1231_v31 = vpop.eup %1230 }
 0x2ad   : > { %v764_v63 = vrot.slane %v1231_v31, %v763_v44  ;;  %v799_v25 = vrot.slane %v1231_v31, %v798_v52  ;;  %v834_v13 = vrot.slane %v1231_v31, %v833_v5  ;;  %v869_v11 = vrot.slane %v1231_v31, %v868_v46  ;;  %v2150_v44 = vld [vmem:[#allocation32_spill] sm:$0xff] }
 0x2af   : > { %770 = vbcast.lane.b32.xlu1 %v764_v63, 264  ;;  %766 = vbcast.lane.b32.xlu0 %v764_v63, 256 }
 0x2b3   : > { %774 = vbcast.lane.b32.xlu1 %v764_v63, 272  ;;  %782 = vbcast.lane.b32.xlu0 %v764_v63, 288 }
 0x2b7   : > { %778 = vbcast.lane.b32.xlu1 %v764_v63, 280  ;;  %790 = vbcast.lane.b32.xlu0 %v764_v63, 304 }
 0x2bb   : > { %786 = vbcast.lane.b32.xlu1 %v764_v63, 296  ;;  %801 = vbcast.lane.b32.xlu0 %v799_v25, 256 }
 0x2bf   : > { %794 = vbcast.lane.b32.xlu1 %v764_v63, 312  ;;  %809 = vbcast.lane.b32.xlu0 %v799_v25, 272  ;;  %v2151_v63 = vld [vmem:[#allocation13_spill] sm:$0xff] }
 0x2c3   : > { %805 = vbcast.lane.b32.xlu1 %v799_v25, 264  ;;  %817 = vbcast.lane.b32.xlu0 %v799_v25, 288 }
 0x2c7   : > { %813 = vbcast.lane.b32.xlu1 %v799_v25, 280  ;;  %825 = vbcast.lane.b32.xlu0 %v799_v25, 304 }
 0x2cb   : > { %821 = vbcast.lane.b32.xlu1 %v799_v25, 296  ;;  %836 = vbcast.lane.b32.xlu0 %v834_v13, 256 }
 0x2cf   : > { %829 = vbcast.lane.b32.xlu1 %v799_v25, 312  ;;  %844 = vbcast.lane.b32.xlu0 %v834_v13, 272  ;;  %v2152_v25 = vld [vmem:[#allocation14_spill] sm:$0xff] }
 0x2d3   : > { %840 = vbcast.lane.b32.xlu1 %v834_v13, 264  ;;  %852 = vbcast.lane.b32.xlu0 %v834_v13, 288 }
 0x2d7   : > { %848 = vbcast.lane.b32.xlu1 %v834_v13, 280  ;;  %860 = vbcast.lane.b32.xlu0 %v834_v13, 304 }
 0x2db   : > { %856 = vbcast.lane.b32.xlu1 %v834_v13, 296  ;;  %871 = vbcast.lane.b32.xlu0 %v869_v11, 256 }
 0x2df   : > { %864 = vbcast.lane.b32.xlu1 %v834_v13, 312  ;;  %879 = vbcast.lane.b32.xlu0 %v869_v11, 272 }
 0x2e3   : > { %875 = vbcast.lane.b32.xlu1 %v869_v11, 264  ;;  %887 = vbcast.lane.b32.xlu0 %v869_v11, 288 }
 0x2e7   : > { %883 = vbcast.lane.b32.xlu1 %v869_v11, 280  ;;  %895 = vbcast.lane.b32.xlu0 %v869_v11, 304 }
 0x2eb   : > { %891 = vbcast.lane.b32.xlu1 %v869_v11, 296 }
 0x2ef   : > { %899 = vbcast.lane.b32.xlu1 %v869_v11, 312  ;;  %v2153_v11 = vld [vmem:[#allocation43_spill] sm:$0xff] }
 0x321   : > { %v771_v32 = vpop.permute.xlu1 %770  ;;  %v767_v40 = vpop.permute.xlu0 %766 }
 0x322   : > { %v903_v22 = vmul.f32 %v771_v32, %v1486_v8  ;;  %v904_v47 = vmul.f32 %v771_v32, %v1489_v9  ;;  %v901_v34 = vmul.f32 %v767_v40, %v1470_v2  ;;  %v902_v33 = vmul.f32 %v767_v40, %v1475_v4  ;;  %v2154_v40 = vld [vmem:[#allocation44_spill] sm:$0xff] }
 0x324   : > { %967 = vst [vmem:[%s1862_s6 + $0x10] sm:$0xff] %v903_v22  ;;  %968 = vst [vmem:[%s1862_s6 + $0x18] sm:$0xff] %v904_v47  ;;  %v2155_v47 = vld [vmem:[#allocation19_spill] sm:$0xff] }
 0x325   : > { %965 = vst [vmem:[%s1862_s6] sm:$0xff] %v901_v34  ;;  %966 = vst [vmem:[%s1862_s6 + $0x8] sm:$0xff] %v902_v33  ;;  %v775_v8 = vpop.permute.xlu1 %774  ;;  %v783_v2 = vpop.permute.xlu0 %782  ;;  %v2156_v33 = vld [vmem:[#allocation20_spill] sm:$0xff] }
 0x326   : > { %v905_v4 = vmul.f32 %v775_v8, %v1502_v14  ;;  %v906_v9 = vmul.f32 %v775_v8, %v1505_v15  ;;  %v909_v20 = vmul.f32 %v783_v2, %v1560_v36  ;;  %v910_v58 = vmul.f32 %v783_v2, %v1563_v37 }
 0x328   : > { %969 = vst [vmem:[%s1862_s6 + $0x20] sm:$0xff] %v905_v4  ;;  %970 = vst [vmem:[%s1862_s6 + $0x28] sm:$0xff] %v906_v9  ;;  %v2157_v9 = vld [vmem:[#allocation11_spill] sm:$0xff] }
 0x329   : > { %973 = vst [vmem:[%s1862_s6 + $0x40] sm:$0xff] %v909_v20  ;;  %974 = vst [vmem:[%s1862_s6 + $0x48] sm:$0xff] %v910_v58  ;;  %v779_v38 = vpop.permute.xlu1 %778  ;;  %v791_v51 = vpop.permute.xlu0 %790  ;;  %v2158_v58 = vld [vmem:[#allocation12_spill] sm:$0xff] }
 0x32a   : > { %v907_v35 = vmul.f32 %v779_v38, %v1534_v26  ;;  %v908_v14 = vmul.f32 %v779_v38, %v1537_v27  ;;  %v913_v15 = vmul.f32 %v791_v51, %v1624_v60  ;;  %v914_v36 = vmul.f32 %v791_v51, %v1627_v61  ;;  %v2159_v51 = vld [vmem:[#allocation29_spill] sm:$0xff] }
 0x32c   : > { %971 = vst [vmem:[%s1862_s6 + $0x30] sm:$0xff] %v907_v35  ;;  %972 = vst [vmem:[%s1862_s6 + $0x38] sm:$0xff] %v908_v14  ;;  %v2160_v14 = vld [vmem:[#allocation30_spill] sm:$0xff] }
 0x32d   : > { %977 = vst [vmem:[%s1862_s6 + $0x60] sm:$0xff] %v913_v15  ;;  %978 = vst [vmem:[%s1862_s6 + $0x68] sm:$0xff] %v914_v36  ;;  %v787_v37 = vpop.permute.xlu1 %786  ;;  %v802_v23 = vpop.permute.xlu0 %801 }
 0x32e   : > { %v911_v57 = vmul.f32 %v787_v37, %v1592_v48  ;;  %v912_v26 = vmul.f32 %v787_v37, %v1595_v49  ;;  %v917_v27 = vmul.f32 %v802_v23, %v1464_v0  ;;  %v918_v60 = vmul.f32 %v802_v23, %v1467_v1  ;;  %v2161_v23 = vld [vmem:[#allocation23_spill] sm:$0xff] }
 0x330   : > { %975 = vst [vmem:[%s1862_s6 + $0x50] sm:$0xff] %v911_v57  ;;  %976 = vst [vmem:[%s1862_s6 + $0x58] sm:$0xff] %v912_v26  ;;  %v2162_v26 = vld [vmem:[#allocation24_spill] sm:$0xff] }
 0x331   : > { %981 = vst [vmem:[%s1862_s6 + $0x80] sm:$0xff] %v917_v27  ;;  %982 = vst [vmem:[%s1862_s6 + $0x88] sm:$0xff] %v918_v60  ;;  %v795_v61 = vpop.permute.xlu1 %794  ;;  %v810_v53 = vpop.permute.xlu0 %809  ;;  %v2163_v60 = vld [vmem:[#allocation41_spill] sm:$0xff] }
 0x332   : > { %v915_v18 = vmul.f32 %v795_v61, %v1656_v28  ;;  %v916_v48 = vmul.f32 %v795_v61, %v1659_v29  ;;  %v921_v49 = vmul.f32 %v810_v53, %v1496_v12  ;;  %v922_v0 = vmul.f32 %v810_v53, %v2140_v30  ;;  %v2164_v53 = vld [vmem:[#allocation42_spill] sm:$0xff]  ;;  %v2165_v30 = vld [vmem:[#allocation35_spill] sm:$0xff] }
 0x334   : > { %979 = vst [vmem:[%s1862_s6 + $0x70] sm:$0xff] %v915_v18  ;;  %980 = vst [vmem:[%s1862_s6 + $0x78] sm:$0xff] %v916_v48 }
 0x335   : > { %985 = vst [vmem:[%s1862_s6 + $0xa0] sm:$0xff] %v921_v49  ;;  %986 = vst [vmem:[%s1862_s6 + $0xa8] sm:$0xff] %v922_v0  ;;  %v806_v1 = vpop.permute.xlu1 %805  ;;  %v818_v42 = vpop.permute.xlu0 %817 }
 0x336   : > { %v919_v21 = vmul.f32 %v806_v1, %v2141_v62  ;;  %v920_v28 = vmul.f32 %v806_v1, %v2142_v10  ;;  %v925_v29 = vmul.f32 %v818_v42, %v2143_v50  ;;  %v926_v12 = vmul.f32 %v818_v42, %v2144_v7  ;;  %v2166_v1 = vld [vmem:[#allocation36_spill] sm:$0xff]  ;;  %v2167_v62 = vld [vmem:[#allocation17_spill] sm:$0xff]  ;;  %v2168_v10 = vld [vmem:[#allocation18_spill] sm:$0xff] }
 0x337   : > { %v2169_v7 = vld [vmem:[#allocation45_spill] sm:$0xff] }
 0x338   : > { %983 = vst [vmem:[%s1862_s6 + $0x90] sm:$0xff] %v919_v21  ;;  %984 = vst [vmem:[%s1862_s6 + $0x98] sm:$0xff] %v920_v28 }
 0x339   : > { %989 = vst [vmem:[%s1862_s6 + $0xc0] sm:$0xff] %v925_v29  ;;  %990 = vst [vmem:[%s1862_s6 + $0xc8] sm:$0xff] %v926_v12  ;;  %v814_v59 = vpop.permute.xlu1 %813  ;;  %v826_v19 = vpop.permute.xlu0 %825 }
 0x33a   : > { %v923_v17 = vmul.f32 %v814_v59, %v2145_v6  ;;  %v924_v55 = vmul.f32 %v814_v59, %v2146_v16  ;;  %v929_v39 = vmul.f32 %v826_v19, %v2147_v3  ;;  %v930_v41 = vmul.f32 %v826_v19, %v2148_v54  ;;  %v2170_v59 = vld [vmem:[#allocation46_spill] sm:$0xff]  ;;  %v2171_v6 = vld [vmem:[#allocation27_spill] sm:$0xff]  ;;  %v2172_v16 = vld [vmem:[#allocation28_spill] sm:$0xff] }
 0x33b   : > { %v2173_v54 = vld [vmem:[#allocation21_spill] sm:$0xff] }
 0x33c   : > { %987 = vst [vmem:[%s1862_s6 + $0xb0] sm:$0xff] %v923_v17  ;;  %988 = vst [vmem:[%s1862_s6 + $0xb8] sm:$0xff] %v924_v55 }
 0x33d   : > { %993 = vst [vmem:[%s1862_s6 + $0xe0] sm:$0xff] %v929_v39  ;;  %994 = vst [vmem:[%s1862_s6 + $0xe8] sm:$0xff] %v930_v41  ;;  %v822_v43 = vpop.permute.xlu1 %821  ;;  %v837_v24 = vpop.permute.xlu0 %836 }
 0x33e   : > { %v927_v45 = vmul.f32 %v822_v43, %v2149_v56  ;;  %v928_v31 = vmul.f32 %v822_v43, %v2150_v44  ;;  %v933_v52 = vmul.f32 %v837_v24, %v2151_v63  ;;  %v934_v5 = vmul.f32 %v837_v24, %v2152_v25  ;;  %v2174_v43 = vld [vmem:[#allocation22_spill] sm:$0xff]  ;;  %v2175_v56 = vld [vmem:[#allocation39_spill] sm:$0xff]  ;;  %v2176_v44 = vld [vmem:[#allocation40_spill] sm:$0xff] }
 0x33f   : > { %v2177_v25 = vld [vmem:[#allocation33_spill] sm:$0xff] }
 0x340   : > { %991 = vst [vmem:[%s1862_s6 + $0xd0] sm:$0xff] %v927_v45  ;;  %992 = vst [vmem:[%s1862_s6 + $0xd8] sm:$0xff] %v928_v31 }
 0x341   : > { %997 = vst [vmem:[%s1862_s6 + $0x100] sm:$0xff] %v933_v52  ;;  %998 = vst [vmem:[%s1862_s6 + $0x108] sm:$0xff] %v934_v5  ;;  %v830_v13 = vpop.permute.xlu1 %829  ;;  %v845_v46 = vpop.permute.xlu0 %844 }
 0x342   : > { %v931_v32 = vmul.f32 %v830_v13, %v2153_v11  ;;  %v932_v22 = vmul.f32 %v830_v13, %v2154_v40  ;;  %v937_v34 = vmul.f32 %v845_v46, %v2155_v47  ;;  %v938_v8 = vmul.f32 %v845_v46, %v2156_v33  ;;  %v2178_v13 = vld [vmem:[#allocation34_spill] sm:$0xff]  ;;  %v2179_v11 = vld [vmem:[#allocation51_spill] sm:$0xff]  ;;  %v2180_v40 = vld [vmem:[#allocation52_spill] sm:$0xff] }
 0x344   : > { %995 = vst [vmem:[%s1862_s6 + $0xf0] sm:$0xff] %v931_v32  ;;  %996 = vst [vmem:[%s1862_s6 + $0xf8] sm:$0xff] %v932_v22 }
 0x345   : > { %1001 = vst [vmem:[%s1862_s6 + $0x120] sm:$0xff] %v937_v34  ;;  %1002 = vst [vmem:[%s1862_s6 + $0x128] sm:$0xff] %v938_v8  ;;  %v841_v2 = vpop.permute.xlu1 %840  ;;  %v853_v4 = vpop.permute.xlu0 %852  ;;  %v2181_v34 = vld [vmem:[#allocation47_spill] sm:$0xff]  ;;  %v2182_v8 = vld [vmem:[#allocation48_spill] sm:$0xff] }
 0x346   : > { %v935_v20 = vmul.f32 %v841_v2, %v2157_v9  ;;  %v936_v38 = vmul.f32 %v841_v2, %v2158_v58  ;;  %v941_v35 = vmul.f32 %v853_v4, %v2159_v51  ;;  %v942_v15 = vmul.f32 %v853_v4, %v2160_v14  ;;  %v2183_v9 = vld [vmem:[#allocation49_spill] sm:$0xff]  ;;  %v2184_v58 = vld [vmem:[#allocation50_spill] sm:$0xff] }
 0x348   : > { %999 = vst [vmem:[%s1862_s6 + $0x110] sm:$0xff] %v935_v20  ;;  %1000 = vst [vmem:[%s1862_s6 + $0x118] sm:$0xff] %v936_v38 }
 0x349   : > { %1005 = vst [vmem:[%s1862_s6 + $0x140] sm:$0xff] %v941_v35  ;;  %1006 = vst [vmem:[%s1862_s6 + $0x148] sm:$0xff] %v942_v15  ;;  %v849_v36 = vpop.permute.xlu1 %848  ;;  %v861_v37 = vpop.permute.xlu0 %860 }
 0x34a   : > { %v939_v57 = vmul.f32 %v849_v36, %v2161_v23  ;;  %v940_v27 = vmul.f32 %v849_v36, %v2162_v26  ;;  %v945_v61 = vmul.f32 %v861_v37, %v2163_v60  ;;  %v946_v18 = vmul.f32 %v861_v37, %v2164_v53 }
 0x34c   : > { %1003 = vst [vmem:[%s1862_s6 + $0x130] sm:$0xff] %v939_v57  ;;  %1004 = vst [vmem:[%s1862_s6 + $0x138] sm:$0xff] %v940_v27 }
 0x34d   : > { %1009 = vst [vmem:[%s1862_s6 + $0x160] sm:$0xff] %v945_v61  ;;  %1010 = vst [vmem:[%s1862_s6 + $0x168] sm:$0xff] %v946_v18  ;;  %v857_v48 = vpop.permute.xlu1 %856  ;;  %v872_v49 = vpop.permute.xlu0 %871 }
 0x34e   : > { %v943_v0 = vmul.f32 %v857_v48, %v2165_v30  ;;  %v944_v42 = vmul.f32 %v857_v48, %v2166_v1  ;;  %v949_v21 = vmul.f32 %v872_v49, %v2167_v62  ;;  %v950_v28 = vmul.f32 %v872_v49, %v2168_v10 }
 0x350   : > { %1007 = vst [vmem:[%s1862_s6 + $0x150] sm:$0xff] %v943_v0  ;;  %1008 = vst [vmem:[%s1862_s6 + $0x158] sm:$0xff] %v944_v42 }
 0x351   : > { %1013 = vst [vmem:[%s1862_s6 + $0x180] sm:$0xff] %v949_v21  ;;  %1014 = vst [vmem:[%s1862_s6 + $0x188] sm:$0xff] %v950_v28  ;;  %v865_v50 = vpop.permute.xlu1 %864  ;;  %v880_v29 = vpop.permute.xlu0 %879 }
 0x352   : > { %v947_v12 = vmul.f32 %v865_v50, %v2169_v7  ;;  %v948_v19 = vmul.f32 %v865_v50, %v2170_v59  ;;  %v953_v17 = vmul.f32 %v880_v29, %v2171_v6  ;;  %v954_v55 = vmul.f32 %v880_v29, %v2172_v16 }
 0x354   : > { %1011 = vst [vmem:[%s1862_s6 + $0x170] sm:$0xff] %v947_v12  ;;  %1012 = vst [vmem:[%s1862_s6 + $0x178] sm:$0xff] %v948_v19 }
 0x355   : > { %1017 = vst [vmem:[%s1862_s6 + $0x1a0] sm:$0xff] %v953_v17  ;;  %1018 = vst [vmem:[%s1862_s6 + $0x1a8] sm:$0xff] %v954_v55  ;;  %v876_v3 = vpop.permute.xlu1 %875  ;;  %v888_v39 = vpop.permute.xlu0 %887 }
 0x356   : > { %v951_v41 = vmul.f32 %v876_v3, %v2173_v54  ;;  %v952_v24 = vmul.f32 %v876_v3, %v2174_v43  ;;  %v957_v45 = vmul.f32 %v888_v39, %v2175_v56  ;;  %v958_v31 = vmul.f32 %v888_v39, %v2176_v44 }
 0x358   : > { %1015 = vst [vmem:[%s1862_s6 + $0x190] sm:$0xff] %v951_v41  ;;  %1016 = vst [vmem:[%s1862_s6 + $0x198] sm:$0xff] %v952_v24 }
 0x359   : > { %1021 = vst [vmem:[%s1862_s6 + $0x1c0] sm:$0xff] %v957_v45  ;;  %1022 = vst [vmem:[%s1862_s6 + $0x1c8] sm:$0xff] %v958_v31  ;;  %v884_v63 = vpop.permute.xlu1 %883  ;;  %v896_v52 = vpop.permute.xlu0 %895 }
 0x35a   : > { %v955_v5 = vmul.f32 %v884_v63, %v2177_v25  ;;  %v956_v46 = vmul.f32 %v884_v63, %v2178_v13  ;;  %v961_v32 = vmul.f32 %v896_v52, %v2179_v11  ;;  %v962_v22 = vmul.f32 %v896_v52, %v2180_v40 }
 0x35c   : > { %1019 = vst [vmem:[%s1862_s6 + $0x1b0] sm:$0xff] %v955_v5  ;;  %1020 = vst [vmem:[%s1862_s6 + $0x1b8] sm:$0xff] %v956_v46 }
 0x35d   : > { %1025 = vst [vmem:[%s1862_s6 + $0x1e0] sm:$0xff] %v961_v32  ;;  %1026 = vst [vmem:[%s1862_s6 + $0x1e8] sm:$0xff] %v962_v22  ;;  %v892_v47 = vpop.permute.xlu1 %891 }
 0x35e   : > { %v959_v33 = vmul.f32 %v892_v47, %v2181_v34  ;;  %v960_v2 = vmul.f32 %v892_v47, %v2182_v8 }
 0x360   : > { %1023 = vst [vmem:[%s1862_s6 + $0x1d0] sm:$0xff] %v959_v33  ;;  %1024 = vst [vmem:[%s1862_s6 + $0x1d8] sm:$0xff] %v960_v2 }
 0x361   : > { %v900_v4 = vpop.permute.xlu1 %899 }
 0x362   : > { %v963_v20 = vmul.f32 %v900_v4, %v2183_v9  ;;  %v964_v38 = vmul.f32 %v900_v4, %v2184_v58 }
 0x364   : > { %1027 = vst [vmem:[%s1862_s6 + $0x1f0] sm:$0xff] %v963_v20  ;;  %1028 = vst [vmem:[%s1862_s6 + $0x1f8] sm:$0xff] %v964_v38 }
 0x365   : > { %1273 = shalt.err (!%p1270_p10)
}
 0x366   : > { %s1274_s28 = scalar_lea.hbm %s1989_s19, 8192  ;;  %s1278_s10 = scalar_lea.hbm %s2041_s3, 16384 }
 0x367   : > { %p1275_p0 = scmp.ne.s32.totalorder %s1989_s19, %s1274_s28  ;;  %p1279_p1 = scmp.lt.s32.totalorder %s1989_s19, %s2041_s3 }
 0x368   : > { %p1280_p3 = scmp.lt.s32.totalorder %s1278_s10, %s1274_s28 }
 0x369   : > { %p1276_p2 = pnand %p1275_p0, %p2185_p12 }
 0x36a   : > { %p1281_p6 = por %p1280_p3, %p1279_p1 }
 0x36b   : > { %p1277_p9 = pneg %p1276_p2 }
 0x36d   : > { %p1282_p11 = pnand %p1281_p6, %p1277_p9 }
 0x36f   : > { %1285 = shalt.err (!%p1282_p11)
}
 0x370   : > { %s1332_s4 = smov 256   ;;  %s1333_s6 = smov 16  }
 0x371   : > { %1178 = dma.vmem_to_hbm [thread:$0]  (%p2185_p12), %s1991_s7, 8192, %s1989_s19, %s1030_s16, %s1332_s4, %s1332_s4, %s1333_s6  }
 0x372 PF: > { %s1059_s9 = sand.u32 1, %s1312_s12   ;;  %p2186_p13 = scmp.ne.s32.totalorder %s2092_s25, 0 }
 0x373   : > { %p2187_p4 = scmp.ge.s32.totalorder %s1324_s15, 2  ;;  %s1060_s8 = scalar_lea.sflag [#allocation4], %s1059_s9 }
 0x375   : > { %p1185_p5 = pnand %p2187_p4, %p2186_p13 }
 0x377   : > { %p1186_p7 = pneg %p1185_p5 }
 0x379   : > { %1307 = dma.done.wait (%p1186_p7), %s1060_s8, 8192  }
 0x37a   : > { %1309 = vsyncadd (%p1186_p7), %s1060_s8, 4294959104  ;;  %p16_p8 = scmp.ge.s32.totalorder %s1379_s18, 4   ;;  %s2188_s12 = smov %s1316_s13 }
 0x37b   : > { %s2189_s13 = smov %s1320_s14  ;;  %s2190_s14 = smov %s1391_s21 }
 0x37c   : > { %s2191_s15 = smov %s1379_s18  ;;  %18 = sbr.rel (!%p16_p8) target bundleno = 5 (0x5), region = 77 }
 0x381   :  { %1065 = vsyncpa [#allocation3], 1 }
 0x382   :  { %1067 = vsyncpa [#allocation3 + $0x1], 1 }
 0x383   :  { %1068 = vsyncpa [#allocation4], 1 }
 0x384   :  { %1070 = vsyncpa [#allocation4 + $0x1], 1 }

</bundles_post_ra>
